<compile_context>
chip_gen: v7x
topology: tpu7x:2x2x1
jax: 0.10.0
libtpu: 0.0.40
codegen_flags: <defaults>
</compile_context>

<pallas_src>
import jax
import jax.numpy as jnp
from jax.experimental import pallas as pl
from jax.experimental.pallas import tpu as pltpu

_LANE = 128  # TPU lane width


def _round_up(n, m):
    return ((n + m - 1) // m) * m


def _tpu_vmem_capacity_bytes():
    """Physical VMEM per TensorCore; conservative fallback if the query fails."""
    try:
        cap = int(pltpu.get_tpu_info().vmem_capacity_bytes)
        if cap > 0:
            return cap
    except Exception:
        pass
    return 64 * 2**20  # v7x is the smallest (64 MiB / TC); safe everywhere


def _num_tensorcores():
    """TensorCores per chip (2 on v7x, 1 on v5e/v6e); 1 if unknown."""
    try:
        info = pltpu.get_tpu_info()
        for attr in ("num_cores", "num_tensorcores", "tensorcore_count",
                     "cores_per_chip"):
            v = getattr(info, attr, None)
            if isinstance(v, int) and v > 0:
                return v
    except Exception:
        pass
    return 1


# ----------------------------- kernels --------------------------------------

def _kernel_shortcut(x_ref, w0_ref, b0_ref, w1_ref, b1_ref, ws_ref, o_ref):
    # x arrives already in the MXU operand dtype (bf16 by default).
    x = x_ref[...]                                              # (tb, size_in)
    h0 = jnp.maximum(x, 0)                                      # relu(x)
    net = jnp.dot(h0, w0_ref[...],
                  preferred_element_type=jnp.float32) + b0_ref[...]   # f32 acc + bias
    h1 = jnp.maximum(net, 0.0).astype(w1_ref.dtype)             # relu(net) -> operand dtype
    dx = jnp.dot(h1, w1_ref[...],
                 preferred_element_type=jnp.float32) + b1_ref[...]
    x_s = jnp.dot(x, ws_ref[...],
                  preferred_element_type=jnp.float32)           # projection shortcut (no bias)
    o_ref[...] = (x_s + dx).astype(o_ref.dtype)


def _kernel_identity(x_ref, w0_ref, b0_ref, w1_ref, b1_ref, o_ref):
    x = x_ref[...]                                              # (tb, out_p), io dtype
    h0 = jnp.maximum(x, 0).astype(w0_ref.dtype)
    net = jnp.dot(h0, w0_ref[...],
                  preferred_element_type=jnp.float32) + b0_ref[...]
    h1 = jnp.maximum(net, 0.0).astype(w1_ref.dtype)
    dx = jnp.dot(h1, w1_ref[...],
                 preferred_element_type=jnp.float32) + b1_ref[...]
    # Identity shortcut: residual add in f32.
    o_ref[...] = (x.astype(jnp.float32) + dx).astype(o_ref.dtype)


# ----------------------------- wrapper ---------------------------------------

def prepare_resnet_block_params(params, *, compute_dtype=jnp.bfloat16):
    """One-time pad (lane-dense shapes) + cast of the block's weights.

    Call once per parameter set and reuse the result across forwards so the
    pad/astype HBM traffic is off the steady-state critical path.
    """
    size_in, size_h = params["w0"].shape
    size_out = params["w1"].shape[1]
    has_shortcut = "ws" in params
    h_p = _round_up(size_h, _LANE)
    out_p = _round_up(size_out, _LANE)
    # Projection shortcut: keep the K (size_in) dim unpadded — a block dim equal
    # to the full array dim is legal, and padding it only inflates x HBM traffic.
    # Identity shortcut: x feeds the residual add directly, so its feature dim
    # must live in the same padded layout as the output.
    in_p = size_in if has_shortcut else out_p

    prepared = {
        "w0": jnp.pad(params["w0"],
                      ((0, in_p - size_in), (0, h_p - size_h))).astype(compute_dtype),
        "b0": jnp.pad(params["b0"], (0, h_p - size_h)).reshape(1, h_p).astype(jnp.float32),
        "w1": jnp.pad(params["w1"],
                      ((0, h_p - size_h), (0, out_p - size_out))).astype(compute_dtype),
        "b1": jnp.pad(params["b1"], (0, out_p - size_out)).reshape(1, out_p).astype(jnp.float32),
        "_meta": dict(size_in=size_in, size_h=size_h, size_out=size_out,
                      in_p=in_p, h_p=h_p, out_p=out_p,
                      compute_dtype=jnp.dtype(compute_dtype)),
    }
    if has_shortcut:
        prepared["ws"] = jnp.pad(params["ws"],
                                 ((0, 0), (0, out_p - size_out))).astype(compute_dtype)
    return prepared


def resnet_block_fc(x, params, *, block_rows=256, compute_dtype=jnp.bfloat16,
                    vmem_budget_bytes=None):
    """ResnetBlockFC forward pass with a fused Pallas TPU kernel.

    x:       (B, size_in)
    params:  raw dict {w0,b0,w1,b1[,ws]} or the output of
             prepare_resnet_block_params (preferred: pad/cast happens once).
    """
    if "_meta" not in params:
        params = prepare_resnet_block_params(params, compute_dtype=compute_dtype)
    meta = params["_meta"]
    size_in, size_out = meta["size_in"], meta["size_out"]
    in_p, h_p, out_p = meta["in_p"], meta["h_p"], meta["out_p"]
    compute_dtype = meta["compute_dtype"]
    has_shortcut = "ws" in params

    B, xin = x.shape
    assert xin == size_in

    # x presented to the kernel: compute dtype for the projection path (it is
    # only ever an MXU operand there -> half the DMA), original dtype for the
    # identity path (the residual add happens in f32).
    x_kernel_dtype = compute_dtype if has_shortcut else x.dtype

    cdt_bytes = jnp.dtype(compute_dtype).itemsize
    x_bytes = jnp.dtype(x_kernel_dtype).itemsize
    out_bytes = jnp.dtype(x.dtype).itemsize

    vmem_cap = _tpu_vmem_capacity_bytes()
    if vmem_budget_bytes is None:
        # ~48 MiB on v7x (64 MiB/TC), ~96 MiB on v5e/v6e (128 MiB).
        vmem_budget_bytes = int(vmem_cap * 0.75)

    # --- batch tile selection -------------------------------------------------
    b8 = _round_up(B, 8)
    tb = min(_round_up(block_rows, 8), b8)
    ncores = _num_tensorcores()
    if ncores > 1 and b8 >= ncores * 128 and pl.cdiv(b8, tb) < ncores:
        # Multi-TensorCore chips (v7x): make sure every core gets >= one tile.
        tb = _round_up(pl.cdiv(b8, ncores), 128)

    def _vmem_estimate(tb_):
        # Weights/biases: single-buffered (constant index_map -> pl.Buffered(1)).
        w_bytes = (in_p * h_p + h_p * out_p
                   + (in_p * out_p if has_shortcut else 0)) * cdt_bytes
        w_bytes += (h_p + out_p) * 4
        # x / out tiles are double-buffered by the pipeline.
        io_bytes = 2 * tb_ * (in_p * x_bytes + out_p * out_bytes)
        # Live in-kernel intermediates (h0, net, h1, dx, x_s), mostly f32.
        act_bytes = tb_ * (in_p * cdt_bytes + 2 * h_p * 4 + 2 * out_p * 4)
        return w_bytes + io_bytes + act_bytes

    # Shrink the batch tile only down to 128 rows: smaller tiles starve the MXU.
    tb_floor = min(tb, 128)
    while _vmem_estimate(tb) > vmem_budget_bytes and tb > tb_floor:
        tb = max(tb_floor, _round_up(tb // 2, 8))
    # TODO(synk): if even a 128-row tile overflows VMEM (very large size_in /
    # size_h / size_out), switch to a K-reduction grid axis with an f32 VMEM
    # accumulator (stream weight slabs) instead of shrinking tb further; not
    # needed for this module's typical hidden sizes.

    bp = _round_up(B, tb)
    grid = (bp // tb,)

    # --- present x in the layout the kernel expects (copy only if needed) ------
    xp = x.astype(x_kernel_dtype) if x.dtype != x_kernel_dtype else x
    if bp != B or in_p != size_in:
        xp = jnp.pad(xp, ((0, bp - B), (0, in_p - size_in)))

    vmem_limit = int(min(max(_vmem_estimate(tb) * 1.25, 32 * 2**20),
                         vmem_cap - 2 * 2**20))

    def _call(single_buffer_weights):
        def wspec(shape):
            idx = lambda i: (0, 0)
            if single_buffer_weights and hasattr(pl, "Buffered"):
                # Constant index_map -> no point double-buffering these blocks.
                return pl.BlockSpec(shape, idx, pipeline_mode=pl.Buffered(1))
            return pl.BlockSpec(shape, idx)

        in_specs = [
            pl.BlockSpec((tb, in_p), lambda i: (i, 0)),   # x tile (pipelined)
            wspec((in_p, h_p)),                           # w0 (resident)
            wspec((1, h_p)),                              # b0
            wspec((h_p, out_p)),                          # w1
            wspec((1, out_p)),                            # b1
        ]
        args = [xp, params["w0"], params["b0"], params["w1"], params["b1"]]
        if has_shortcut:
            in_specs.append(wspec((in_p, out_p)))         # ws
            args.append(params["ws"])
            kernel = _kernel_shortcut
        else:
            kernel = _kernel_identity

        return pl.pallas_call(
            kernel,
            out_shape=jax.ShapeDtypeStruct((bp, out_p), x.dtype),
            grid_spec=pltpu.PrefetchScalarGridSpec(
                num_scalar_prefetch=0,
                grid=grid,
                in_specs=in_specs,
                out_specs=pl.BlockSpec((tb, out_p), lambda i: (i, 0)),
            ),
            compiler_params=pltpu.CompilerParams(
                dimension_semantics=("parallel",),
                vmem_limit_bytes=vmem_limit,
            ),
        )(*args)

    try:
        out_padded = _call(True)
    except Exception:
        # Some jax versions reject pipeline_mode=pl.Buffered(1) on pallas_call
        # block specs; fall back to default double-buffered weights (identical
        # math, just more VMEM).
        out_padded = _call(False)

    return out_padded[:B, :size_out]


# ----------------------------- test harness ----------------------------------

def init_resnet_block_params(key, size_in, size_out=None, size_h=None, *, zero_fc1=True):
    """Synthetic init mirroring the PyTorch module (fc_1 weight zero by default)."""
    if size_out is None:
        size_out = size_in
    if size_h is None:
        size_h = min(size_in, size_out)
    k0, k1, k2, k3, k4 = jax.random.split(key, 5)
    w0 = jax.random.normal(k0, (size_in, size_h), jnp.float32) * 0.1
    b0 = jax.random.normal(k1, (size_h,), jnp.float32) * 0.1
    if zero_fc1:
        w1 = jnp.zeros((size_h, size_out), jnp.float32)     # nn.init.zeros_
    else:
        w1 = jax.random.normal(k4, (size_h, size_out), jnp.float32) * 0.1
    b1 = jax.random.normal(k2, (size_out,), jnp.float32) * 0.1
    params = {"w0": w0, "b0": b0, "w1": w1, "b1": b1}
    if size_in != size_out:
        params["ws"] = jax.random.normal(k3, (size_in, size_out), jnp.float32) * 0.1
    return params


def resnet_block_fc_ref(x, params):
    """Plain-JAX f32 reference for correctness checking."""
    h0 = jnp.maximum(x, 0.0)
    net = h0 @ params["w0"] + params["b0"]
    h1 = jnp.maximum(net, 0.0)
    dx = h1 @ params["w1"] + params["b1"]
    x_s = x @ params["ws"] if "ws" in params else x
    return x_s + dx


if __name__ == "__main__":
    key = jax.random.PRNGKey(0)
    kx, kp1, kp2, kp3 = jax.random.split(key, 4)

    B, size_in, size_out = 96, 32, 64
    x = jax.random.normal(kx, (B, size_in), jnp.float32)

    # Case 1: projection shortcut, cached prepared (padded+bf16) weights.
    params = init_resnet_block_params(kp1, size_in, size_out)
    prepared = prepare_resnet_block_params(params)          # one-time pad + cast
    out = jax.block_until_ready(resnet_block_fc(x, prepared))
    ref = resnet_block_fc_ref(x, params)
    assert out.shape == (B, size_out)
    assert jnp.allclose(out, ref, atol=5e-2, rtol=5e-2)     # bf16 operand rounding

    # Case 2: identity shortcut (size_in == size_out), bf16 MXU operands.
    params_id = init_resnet_block_params(kp2, size_in)
    out_id = jax.block_until_ready(resnet_block_fc(x, params_id))
    ref_id = resnet_block_fc_ref(x, params_id)
    assert out_id.shape == (B, size_in)
    assert jnp.allclose(out_id, ref_id, atol=5e-2, rtol=5e-2)

    # Case 3: non-zero fc_1 weights with f32 MXU operands -> tight match vs
    # reference (exercises the full math path including the middle matmul).
    params_nz = init_resnet_block_params(kp3, size_in, size_out, zero_fc1=False)
    out_nz = jax.block_until_ready(
        resnet_block_fc(x, params_nz, compute_dtype=jnp.float32))
    ref_nz = resnet_block_fc_ref(x, params_nz)
    assert jnp.allclose(out_nz, ref_nz, atol=1e-4, rtol=1e-4)

    print("KERNEL_OK")
</pallas_src>

<mosaic_0001>
module attributes {stable_mosaic.version = 11 : i64} {
  func.func @_kernel_shortcut(%arg0: i32, %arg1: memref<96x32xbf16, #tpu.memory_space<vmem>>, %arg2: memref<32x128xbf16, #tpu.memory_space<vmem>>, %arg3: memref<1x128xf32, #tpu.memory_space<vmem>>, %arg4: memref<128x128xbf16, #tpu.memory_space<vmem>>, %arg5: memref<1x128xf32, #tpu.memory_space<vmem>>, %arg6: memref<32x128xbf16, #tpu.memory_space<vmem>>, %arg7: memref<96x128xf32, #tpu.memory_space<vmem>>) attributes {dimension_semantics = [#tpu.dimension_semantics<parallel>], iteration_bounds = array<i64: 1>, scalar_prefetch = 0 : i64, scratch_operands = 0 : i64, tpu.core_type = #tpu.core_type<tc>, window_params = [{transform_indices = @transform_0, window_bounds = array<i64: 96, 32>}, {pipeline_mode = #tpu.pipeline_mode<synchronous>, transform_indices = @transform_1, window_bounds = array<i64: 32, 128>}, {pipeline_mode = #tpu.pipeline_mode<synchronous>, transform_indices = @transform_2, window_bounds = array<i64: 1, 128>}, {pipeline_mode = #tpu.pipeline_mode<synchronous>, transform_indices = @transform_3, window_bounds = array<i64: 128, 128>}, {pipeline_mode = #tpu.pipeline_mode<synchronous>, transform_indices = @transform_4, window_bounds = array<i64: 1, 128>}, {pipeline_mode = #tpu.pipeline_mode<synchronous>, transform_indices = @transform_5, window_bounds = array<i64: 32, 128>}, {transform_indices = @transform_6, window_bounds = array<i64: 96, 128>}]} {
    %c0 = arith.constant 0 : index
    %c0_0 = arith.constant 0 : index
    %0 = vector.load %arg1[%c0, %c0_0] : memref<96x32xbf16, #tpu.memory_space<vmem>>, vector<96x32xbf16>
    %cst = arith.constant 0.000000e+00 : bf16
    %1 = vector.broadcast %cst : bf16 to vector<96x32xbf16>
    %2 = arith.maximumf %0, %1 : vector<96x32xbf16>
    %c0_1 = arith.constant 0 : index
    %c0_2 = arith.constant 0 : index
    %3 = vector.load %arg2[%c0_1, %c0_2] : memref<32x128xbf16, #tpu.memory_space<vmem>>, vector<32x128xbf16>
    %cst_3 = arith.constant dense<0.000000e+00> : vector<96x128xf32>
    %4 = tpu.matmul %2, %3, %cst_3 {dimension_numbers = #tpu.dot_dimension_numbers<[1], [0], [0], [1], [0, 0, 1, 1], [], []>} : vector<96x32xbf16>, vector<32x128xbf16>, vector<96x128xf32> -> vector<96x128xf32>
    %c0_4 = arith.constant 0 : index
    %c0_5 = arith.constant 0 : index
    %5 = vector.load %arg3[%c0_4, %c0_5] : memref<1x128xf32, #tpu.memory_space<vmem>>, vector<1x128xf32>
    %6 = vector.broadcast %5 : vector<1x128xf32> to vector<96x128xf32>
    %7 = arith.addf %4, %6 : vector<96x128xf32>
    %cst_6 = arith.constant 0.000000e+00 : f32
    %8 = vector.broadcast %cst_6 : f32 to vector<96x128xf32>
    %9 = arith.maximumf %7, %8 : vector<96x128xf32>
    %10 = arith.truncf %9 : vector<96x128xf32> to vector<96x128xbf16>
    %c0_7 = arith.constant 0 : index
    %c0_8 = arith.constant 0 : index
    %11 = vector.load %arg4[%c0_7, %c0_8] : memref<128x128xbf16, #tpu.memory_space<vmem>>, vector<128x128xbf16>
    %cst_9 = arith.constant dense<0.000000e+00> : vector<96x128xf32>
    %12 = tpu.matmul %10, %11, %cst_9 {dimension_numbers = #tpu.dot_dimension_numbers<[1], [0], [0], [1], [0, 0, 1, 1], [], []>} : vector<96x128xbf16>, vector<128x128xbf16>, vector<96x128xf32> -> vector<96x128xf32>
    %c0_10 = arith.constant 0 : index
    %c0_11 = arith.constant 0 : index
    %13 = vector.load %arg5[%c0_10, %c0_11] : memref<1x128xf32, #tpu.memory_space<vmem>>, vector<1x128xf32>
    %14 = vector.broadcast %13 : vector<1x128xf32> to vector<96x128xf32>
    %15 = arith.addf %12, %14 : vector<96x128xf32>
    %c0_12 = arith.constant 0 : index
    %c0_13 = arith.constant 0 : index
    %16 = vector.load %arg6[%c0_12, %c0_13] : memref<32x128xbf16, #tpu.memory_space<vmem>>, vector<32x128xbf16>
    %cst_14 = arith.constant dense<0.000000e+00> : vector<96x128xf32>
    %17 = tpu.matmul %0, %16, %cst_14 {dimension_numbers = #tpu.dot_dimension_numbers<[1], [0], [0], [1], [0, 0, 1, 1], [], []>} : vector<96x32xbf16>, vector<32x128xbf16>, vector<96x128xf32> -> vector<96x128xf32>
    %18 = arith.addf %17, %15 : vector<96x128xf32>
    %c0_15 = arith.constant 0 : index
    %c0_16 = arith.constant 0 : index
    %19 = vector.load %arg7[%c0_15, %c0_16] : memref<96x128xf32, #tpu.memory_space<vmem>>, vector<96x128xf32>
    tpu.vector_store %arg7[%c0_15, %c0_16], %18 {strides = array<i32>} : memref<96x128xf32, #tpu.memory_space<vmem>>, vector<96x128xf32>,
    return
  }
  func.func @transform_0(%arg0: i32) -> (i32, i32) {
    %c0_i32 = arith.constant 0 : i32
    %c0_i32_0 = arith.constant 0 : i32
    return %arg0, %c0_i32 : i32, i32
  }
  func.func @transform_1(%arg0: i32) -> (i32, i32) {
    %c0_i32 = arith.constant 0 : i32
    %c0_i32_0 = arith.constant 0 : i32
    %c0_i32_1 = arith.constant 0 : i32
    return %c0_i32, %c0_i32_0 : i32, i32
  }
  func.func @transform_2(%arg0: i32) -> (i32, i32) {
    %c0_i32 = arith.constant 0 : i32
    %c0_i32_0 = arith.constant 0 : i32
    %c0_i32_1 = arith.constant 0 : i32
    return %c0_i32, %c0_i32_0 : i32, i32
  }
  func.func @transform_3(%arg0: i32) -> (i32, i32) {
    %c0_i32 = arith.constant 0 : i32
    %c0_i32_0 = arith.constant 0 : i32
    %c0_i32_1 = arith.constant 0 : i32
    return %c0_i32, %c0_i32_0 : i32, i32
  }
  func.func @transform_4(%arg0: i32) -> (i32, i32) {
    %c0_i32 = arith.constant 0 : i32
    %c0_i32_0 = arith.constant 0 : i32
    %c0_i32_1 = arith.constant 0 : i32
    return %c0_i32, %c0_i32_0 : i32, i32
  }
  func.func @transform_5(%arg0: i32) -> (i32, i32) {
    %c0_i32 = arith.constant 0 : i32
    %c0_i32_0 = arith.constant 0 : i32
    %c0_i32_1 = arith.constant 0 : i32
    return %c0_i32, %c0_i32_0 : i32, i32
  }
  func.func @transform_6(%arg0: i32) -> (i32, i32) {
    %c0_i32 = arith.constant 0 : i32
    %c0_i32_0 = arith.constant 0 : i32
    return %arg0, %c0_i32 : i32, i32
  }
}

module attributes {stable_mosaic.version = 11 : i64} {
  func.func @_kernel_shortcut(%arg0: i32, %arg1: memref<96x32xbf16, #tpu.memory_space<vmem>>, %arg2: memref<32x128xbf16, #tpu.memory_space<vmem>>, %arg3: memref<1x128xf32, #tpu.memory_space<vmem>>, %arg4: memref<128x128xbf16, #tpu.memory_space<vmem>>, %arg5: memref<1x128xf32, #tpu.memory_space<vmem>>, %arg6: memref<32x128xbf16, #tpu.memory_space<vmem>>, %arg7: memref<96x128xf32, #tpu.memory_space<vmem>>) attributes {dimension_semantics = [#tpu.dimension_semantics<parallel>], iteration_bounds = array<i64: 1>, scalar_prefetch = 0 : i64, scratch_operands = 0 : i64, tpu.core_type = #tpu.core_type<tc>, window_params = [{transform_indices = @transform_0, window_bounds = array<i64: 96, 32>}, {pipeline_mode = #tpu.pipeline_mode<synchronous>, transform_indices = @transform_1, window_bounds = array<i64: 32, 128>}, {pipeline_mode = #tpu.pipeline_mode<synchronous>, transform_indices = @transform_2, window_bounds = array<i64: 1, 128>}, {pipeline_mode = #tpu.pipeline_mode<synchronous>, transform_indices = @transform_3, window_bounds = array<i64: 128, 128>}, {pipeline_mode = #tpu.pipeline_mode<synchronous>, transform_indices = @transform_4, window_bounds = array<i64: 1, 128>}, {pipeline_mode = #tpu.pipeline_mode<synchronous>, transform_indices = @transform_5, window_bounds = array<i64: 32, 128>}, {transform_indices = @transform_6, window_bounds = array<i64: 96, 128>}]} {
    %c0 = arith.constant 0 : index
    %c0_0 = arith.constant 0 : index
    %0 = vector.load %arg1[%c0, %c0_0] : memref<96x32xbf16, #tpu.memory_space<vmem>>, vector<96x32xbf16>
    %cst = arith.constant 0.000000e+00 : bf16
    %1 = vector.broadcast %cst : bf16 to vector<96x32xbf16>
    %2 = arith.maximumf %0, %1 : vector<96x32xbf16>
    %c0_1 = arith.constant 0 : index
    %c0_2 = arith.constant 0 : index
    %3 = vector.load %arg2[%c0_1, %c0_2] : memref<32x128xbf16, #tpu.memory_space<vmem>>, vector<32x128xbf16>
    %cst_3 = arith.constant dense<0.000000e+00> : vector<96x128xf32>
    %4 = tpu.matmul %2, %3, %cst_3 {dimension_numbers = #tpu.dot_dimension_numbers<[1], [0], [0], [1], [0, 0, 1, 1], [], []>} : vector<96x32xbf16>, vector<32x128xbf16>, vector<96x128xf32> -> vector<96x128xf32>
    %c0_4 = arith.constant 0 : index
    %c0_5 = arith.constant 0 : index
    %5 = vector.load %arg3[%c0_4, %c0_5] : memref<1x128xf32, #tpu.memory_space<vmem>>, vector<1x128xf32>
    %6 = vector.broadcast %5 : vector<1x128xf32> to vector<96x128xf32>
    %7 = arith.addf %4, %6 : vector<96x128xf32>
    %cst_6 = arith.constant 0.000000e+00 : f32
    %8 = vector.broadcast %cst_6 : f32 to vector<96x128xf32>
    %9 = arith.maximumf %7, %8 : vector<96x128xf32>
    %10 = arith.truncf %9 : vector<96x128xf32> to vector<96x128xbf16>
    %c0_7 = arith.constant 0 : index
    %c0_8 = arith.constant 0 : index
    %11 = vector.load %arg4[%c0_7, %c0_8] : memref<128x128xbf16, #tpu.memory_space<vmem>>, vector<128x128xbf16>
    %cst_9 = arith.constant dense<0.000000e+00> : vector<96x128xf32>
    %12 = tpu.matmul %10, %11, %cst_9 {dimension_numbers = #tpu.dot_dimension_numbers<[1], [0], [0], [1], [0, 0, 1, 1], [], []>} : vector<96x128xbf16>, vector<128x128xbf16>, vector<96x128xf32> -> vector<96x128xf32>
    %c0_10 = arith.constant 0 : index
    %c0_11 = arith.constant 0 : index
    %13 = vector.load %arg5[%c0_10, %c0_11] : memref<1x128xf32, #tpu.memory_space<vmem>>, vector<1x128xf32>
    %14 = vector.broadcast %13 : vector<1x128xf32> to vector<96x128xf32>
    %15 = arith.addf %12, %14 : vector<96x128xf32>
    %c0_12 = arith.constant 0 : index
    %c0_13 = arith.constant 0 : index
    %16 = vector.load %arg6[%c0_12, %c0_13] : memref<32x128xbf16, #tpu.memory_space<vmem>>, vector<32x128xbf16>
    %cst_14 = arith.constant dense<0.000000e+00> : vector<96x128xf32>
    %17 = tpu.matmul %0, %16, %cst_14 {dimension_numbers = #tpu.dot_dimension_numbers<[1], [0], [0], [1], [0, 0, 1, 1], [], []>} : vector<96x32xbf16>, vector<32x128xbf16>, vector<96x128xf32> -> vector<96x128xf32>
    %18 = arith.addf %17, %15 : vector<96x128xf32>
    %c0_15 = arith.constant 0 : index
    %c0_16 = arith.constant 0 : index
    %19 = vector.load %arg7[%c0_15, %c0_16] : memref<96x128xf32, #tpu.memory_space<vmem>>, vector<96x128xf32>
    tpu.vector_store %arg7[%c0_15, %c0_16], %18 {strides = array<i32>} : memref<96x128xf32, #tpu.memory_space<vmem>>, vector<96x128xf32>,
    return
  }
  func.func @transform_0(%arg0: i32) -> (i32, i32) {
    %c0_i32 = arith.constant 0 : i32
    %c0_i32_0 = arith.constant 0 : i32
    return %arg0, %c0_i32 : i32, i32
  }
  func.func @transform_1(%arg0: i32) -> (i32, i32) {
    %c0_i32 = arith.constant 0 : i32
    %c0_i32_0 = arith.constant 0 : i32
    %c0_i32_1 = arith.constant 0 : i32
    return %c0_i32, %c0_i32_0 : i32, i32
  }
  func.func @transform_2(%arg0: i32) -> (i32, i32) {
    %c0_i32 = arith.constant 0 : i32
    %c0_i32_0 = arith.constant 0 : i32
    %c0_i32_1 = arith.constant 0 : i32
    return %c0_i32, %c0_i32_0 : i32, i32
  }
  func.func @transform_3(%arg0: i32) -> (i32, i32) {
    %c0_i32 = arith.constant 0 : i32
    %c0_i32_0 = arith.constant 0 : i32
    %c0_i32_1 = arith.constant 0 : i32
    return %c0_i32, %c0_i32_0 : i32, i32
  }
  func.func @transform_4(%arg0: i32) -> (i32, i32) {
    %c0_i32 = arith.constant 0 : i32
    %c0_i32_0 = arith.constant 0 : i32
    %c0_i32_1 = arith.constant 0 : i32
    return %c0_i32, %c0_i32_0 : i32, i32
  }
  func.func @transform_5(%arg0: i32) -> (i32, i32) {
    %c0_i32 = arith.constant 0 : i32
    %c0_i32_0 = arith.constant 0 : i32
    %c0_i32_1 = arith.constant 0 : i32
    return %c0_i32, %c0_i32_0 : i32, i32
  }
  func.func @transform_6(%arg0: i32) -> (i32, i32) {
    %c0_i32 = arith.constant 0 : i32
    %c0_i32_0 = arith.constant 0 : i32
    return %arg0, %c0_i32 : i32, i32
  }
}

</mosaic_0001>

<bundles_post_ra>
// kernel: tpu_custom_call.1
= control target key start
LH: loop header
LB: loop body
LE: loop exit
PB: predicated region body
PF: predicated region fallthrough
CT: control target
= control target key end

     0   :  { %11 = vsyncpa [#allocation3], 0  ;;  %s955_s0 = inlined_call_operand.vmem [shape: bf16[96,32], index: 0, kind: input, shape index: {}]   ;;  %s956_s1 = inlined_call_operand.hbm [shape: bf16[32,128], index: 1, kind: input, shape index: {}]   ;;  %s957_s2 = inlined_call_operand.vmem [shape: f32[1,128], index: 2, kind: input, shape index: {}]   ;;  %s958_s3 = inlined_call_operand.vmem [shape: bf16[128,128], index: 3, kind: input, shape index: {}]   ;;  %s959_s4 = inlined_call_operand.vmem [shape: f32[1,128], index: 4, kind: input, shape index: {}]   ;;  %s960_s5 = inlined_call_operand.vmem [shape: bf16[32,128], index: 5, kind: input, shape index: {}]   ;;  %s961_s6 = inlined_call_operand.hbm [shape: f32[96,128], index: 6, kind: output, shape index: {}]  }
   0x1   :  { %12 = vsyncpa [#allocation4], 0  ;;  %s785_s21 = smov [#allocation2]   ;;  %s737_s25 = scalar_lea.hbm %s956_s1, 256 }
   0x2   :  { %s20_s22 = sshll.u32 %s785_s21, 4  ;;  %p738_p0 = scmp.ne.s32.totalorder %s956_s1, %s737_s25  ;;  %s21_s22 = int_to_ptr.vmem [resolvable:$true] %s20_s22 }
   0x3   :  { %p741_p1 = scmp.lt.u32.totalorder %s737_s25, %s956_s1 }
   0x5   :  { %p743_p2 = pnand %p741_p1, %p738_p0 }
   0x7   :  { %746 = shalt.err (!%p743_p2)
}
   0x8   :  { %s747_s30 = scalar_lea.vmem %s21_s22, 256  ;;  %p752_p4 = scmp.lt.s32.totalorder %s21_s22, %s21_s22 }
   0x9   :  { %p748_p3 = scmp.ne.s32.totalorder %s21_s22, %s747_s30  ;;  %p753_p5 = scmp.lt.s32.totalorder %s747_s30, %s747_s30 }
   0xb   :  { %p754_p6 = por %p753_p5, %p752_p4 }
   0xd   :  { %p755_p7 = pnand %p754_p6, %p748_p3 }
   0xf   :  { %758 = shalt.err (!%p755_p7)
}
  0x10   :  { %s786_s7 = smov 64   ;;  %s787_s8 = smov 4  }
  0x11   :  { %26 = dma.hbm_to_vmem [thread:$0]  %s956_s1, 256, %s21_s22, [#allocation3], %s786_s7, %s786_s7, %s787_s8  }
  0x12   :  { %781 = dma.done.wait [#allocation3], 256  }
  0x13   :  { %782 = vsyncadd [#allocation3], 4294967040  ;;  %v719_v0 = vld [vmem:[#allocation2] sm:$0xff]   ;;  %v720_v1 = vld [vmem:[#allocation2 + $0x8] sm:$0xff]   ;;  %vm116_vm0 = vcmask 261120   ;;  %v788_v5 = vmov 0  }
  0x14   :  { %628 = vmatprep.subr.bf16.mxu0 %v719_v0  ;;  %v842_v2 = vld [vmem:[%s955_s0] sm:$0xf]  ;;  %v40_v3 = vld [vmem:[%s955_s0 + $0x4] sm:$0xf]  ;;  %v850_v4 = vld [vmem:[%s955_s0 + $0x8] sm:$0xf] }
  0x15   :  { %629 = vmatpush3.bf16.msra.mxu0 %v719_v0  ;;  %v51_v6 = vmax.bf16 %v788_v5, %v842_v2  ;;  %v52_v7 = vmax.bf16 %v788_v5, %v40_v3  ;;  %v856_v8 = vld [vmem:[%s955_s0 + $0xc] sm:$0xf]  ;;  %v53_v9 = vmax.bf16 %v788_v5, %v850_v4  ;;  %v862_v10 = vld [vmem:[%s955_s0 + $0x10] sm:$0xf]  ;;  %v867_v11 = vld [vmem:[%s955_s0 + $0x14] sm:$0xf]  ;;  %v584_v41 = vcombine.low %v842_v2, %v40_v3 }
  0x16   :  { %630 = vmatprep.subr.bf16.mxu0 %v720_v1  ;;  %v54_v12 = vmax.bf16 %v788_v5, %v856_v8  ;;  %v585_v13 = vcombine.low %v850_v4, %v856_v8  ;;  %v55_v14 = vmax.bf16 %v788_v5, %v862_v10  ;;  %v56_v15 = vmax.bf16 %v788_v5, %v867_v11  ;;  %v45_v17 = vld [vmem:[%s955_s0 + $0x18] sm:$0xf]  ;;  %v46_v18 = vld [vmem:[%s955_s0 + $0x1c] sm:$0xf]  ;;  %v47_v20 = vld [vmem:[%s955_s0 + $0x20] sm:$0xf] }
  0x17   :  { %v561_v16 = vcombine.low %v51_v6, %v52_v7  ;;  %v723_v21 = vld [vmem:[%s958_s3] sm:$0xff]   ;;  %v724_v23 = vld [vmem:[%s958_s3 + $0x8] sm:$0xff]   ;;  %v57_v26 = vmax.bf16 %v788_v5, %v45_v17  ;;  %v58_v27 = vmax.bf16 %v788_v5, %v46_v18  ;;  %v725_v28 = vld [vmem:[%s958_s3 + $0x10] sm:$0xff]   ;;  %v59_v29 = vmax.bf16 %v788_v5, %v47_v20 }
  0x18   :  { %v562_v19 = vcombine.low %v53_v9, %v54_v12  ;;  %v563_v22 = vcombine.low %v55_v14, %v56_v15  ;;  %v48_v24 = vld [vmem:[%s955_s0 + $0x24] sm:$0xf]  ;;  %644 = vmatprep.subr.bf16.mxu1 %v723_v21  ;;  %v727_v31 = vld [vmem:[%s958_s3 + $0x18] sm:$0xff]   ;;  %v49_v34 = vld [vmem:[%s955_s0 + $0x28] sm:$0xf]  ;;  %v586_v45 = vcombine.low %v862_v10, %v867_v11  ;;  %v587_v46 = vcombine.low %v45_v17, %v46_v18 }
  0x19   :  { %631 = vmatpush3.bf16.msra.mxu0 %v720_v1  ;;  %632 = vmatprep.mubr.msk.bf16.mxu0 %vm116_vm0, %v561_v16  ;;  %v726_v25 = vld [vmem:[%s960_s5] sm:$0xff]   ;;  %v60_v30 = vmax.bf16 %v788_v5, %v48_v24  ;;  %v564_v32 = vcombine.low %v57_v26, %v58_v27  ;;  %v50_v35 = vld [vmem:[%s955_s0 + $0x2c] sm:$0xf]  ;;  %v61_v36 = vmax.bf16 %v788_v5, %v49_v34  ;;  %v731_v42 = vld [vmem:[%s958_s3 + $0x30] sm:$0xff]  }
  0x1a   :  { %645 = vmatpush3.bf16.msra.mxu1 %v723_v21  ;;  %672 = vmatprep.subr.bf16.mxu0 %v726_v25  ;;  %v62_v37 = vmax.bf16 %v788_v5, %v50_v35  ;;  %v728_v38 = vld [vmem:[%s958_s3 + $0x20] sm:$0xff]   ;;  %v729_v40 = vld [vmem:[%s958_s3 + $0x28] sm:$0xff]   ;;  %v732_v44 = vld [vmem:[%s958_s3 + $0x38] sm:$0xff]   ;;  %v588_v47 = vcombine.low %v47_v20, %v48_v24  ;;  %v589_v48 = vcombine.low %v49_v34, %v50_v35 }
  0x1b   :  { %646 = vmatprep.subr.bf16.mxu1 %v724_v23  ;;  %v565_v33 = vcombine.low %v59_v29, %v60_v30  ;;  %v730_v43 = vld [vmem:[%s960_s5 + $0x8] sm:$0xff]   ;;  %v560_v49 = vld [vmem:[%s957_s2] ss:$0 sm:$0xff] }
  0x1c   :  { %633 = vmatmul.mubr.msk.bf16.vlgmr.msra.gmra.mrb[0].mxu0 %vm116_vm0, %v562_v19  ;;  %v566_v39 = vcombine.low %v61_v36, %v62_v37 }
  0x1d   :  { %636 = vmatprep.mubr.msk.bf16.mxu0 %vm116_vm0, %v563_v22  ;;  %673 = vmatpush3.bf16.msra.mxu0 %v726_v25 }
  0x1e   :  { %647 = vmatpush3.bf16.msra.mxu1 %v724_v23  ;;  %674 = vmatprep.subr.bf16.mxu0 %v730_v43 }
  0x1f   :  { %648 = vmatprep.subr.bf16.mxu1 %v725_v28 }
  0x21   :  { %675 = vmatpush3.bf16.msra.mxu0 %v730_v43 }
  0x22   :  { %649 = vmatpush3.bf16.msra.mxu1 %v725_v28 }
  0x23   :  { %650 = vmatprep.subr.bf16.mxu1 %v727_v31 }
  0x24   :  { %637 = vmatmul.mubr.msk.bf16.gmra.mrb[4].mxu0 %vm116_vm0, %v564_v32 }
  0x25   :  { %640 = vmatprep.mubr.msk.bf16.mxu0 %vm116_vm0, %v565_v33 }
  0x26   :  { %651 = vmatpush3.bf16.msra.mxu1 %v727_v31 }
  0x27   :  { %652 = vmatprep.subr.bf16.mxu1 %v728_v38 }
  0x2a   :  { %653 = vmatpush3.bf16.msra.mxu1 %v728_v38 }
  0x2b   :  { %654 = vmatprep.subr.bf16.mxu1 %v729_v40 }
  0x2c   :  { %641 = vmatmul.mubr.msk.bf16.gmra.mrb[8].mxu0 %vm116_vm0, %v566_v39 }
  0x2d   :  { %676 = vmatprep.mubr.msk.bf16.mxu0 %vm116_vm0, %v584_v41 }
  0x2e   :  { %655 = vmatpush3.bf16.msra.mxu1 %v729_v40  ;;  %v575_v40 = vld [vmem:[%s959_s4] ss:$0 sm:$0xff]  ;;  %s789_s4 = smov [#allocation5]  }
  0x2f   :  { %656 = vmatprep.subr.bf16.mxu1 %v731_v42  ;;  %s548_s29 = sshll.u32 %s789_s4, 4  ;;  %s549_s29 = int_to_ptr.vmem [resolvable:$true] %s548_s29 }
  0x30   :  { %s759_s30 = scalar_lea.vmem %s549_s29, 1536  ;;  %p764_p9 = scmp.lt.s32.totalorder %s549_s29, %s549_s29 }
  0x31   :  { %p760_p8 = scmp.ne.s32.totalorder %s549_s29, %s759_s30  ;;  %p765_p10 = scmp.lt.s32.totalorder %s759_s30, %s759_s30 }
  0x32   :  { %657 = vmatpush3.bf16.msra.mxu1 %v731_v42 }
  0x33   :  { %658 = vmatprep.subr.bf16.mxu1 %v732_v44  ;;  %p766_p11 = por %p765_p10, %p764_p9 }
  0x34   :  { %677 = vmatmul.mubr.msk.bf16.vlgmr.msra.gmra.mrb[12].mxu0 %vm116_vm0, %v585_v13 }
  0x35   :  { %680 = vmatprep.mubr.msk.bf16.mxu0 %vm116_vm0, %v586_v45  ;;  %p767_p12 = pnand %p766_p11, %p760_p8 }
  0x36   :  { %659 = vmatpush3.bf16.msra.mxu1 %v732_v44 }
  0x3c   :  { %681 = vmatmul.mubr.msk.bf16.gmra.mrb[16].mxu0 %vm116_vm0, %v587_v46 }
  0x3d   :  { %684 = vmatprep.mubr.msk.bf16.mxu0 %vm116_vm0, %v588_v47 }
  0x44   :  { %685 = vmatmul.mubr.msk.bf16.gmra.mrb[20].mxu0 %vm116_vm0, %v589_v48 }
  0xef   :  { %v634_v50 = vpop.f32.mrb[0].mxu0 }
  0xf0   :  { %v178_v51 = vadd.f32 %v634_v50, %v560_v49  ;;  %v169_v52 = vpop.f32.mrb[1].mxu0 }
  0xf1   :  { %v170_v53 = vadd.f32 %v560_v49, %v169_v52  ;;  %v635_v54 = vpop.f32.mrb[2].mxu0 }
  0xf2   :  { %v181_v55 = vadd.f32 %v635_v54, %v560_v49  ;;  %v172_v56 = vpop.f32.mrb[3].mxu0  ;;  %v218_v58 = vmax.f32 %v178_v51, 0.0 }
  0xf3   :  { %v173_v57 = vadd.f32 %v560_v49, %v172_v56  ;;  %v216_v60 = vmax.f32 %v170_v53, 0.0 }
  0xf4   :  { %v219_v59 = vmax.f32 %v181_v55, 0.0 }
  0xf5   :  { %v217_v61 = vmax.f32 %v173_v57, 0.0 }
  0xf6   :  { %v229_v62 = vpack.c.bf16 %v219_v59, %v218_v58 }
  0xf7   :  { %v638_v63 = vpop.f32.mrb[4].mxu0  ;;  %v228_v0 = vpack.c.bf16 %v217_v61, %v216_v60 }
  0xf8   :  { %v194_v1 = vadd.f32 %v638_v63, %v560_v49  ;;  %v185_v2 = vpop.f32.mrb[5].mxu0 }
  0xf9   :  { %v186_v3 = vadd.f32 %v560_v49, %v185_v2  ;;  %v639_v4 = vpop.f32.mrb[6].mxu0  ;;  %660 = vmatprep.mubr.bf16.mxu1 %v228_v0 }
  0xfa   :  { %v197_v5 = vadd.f32 %v639_v4, %v560_v49  ;;  %v188_v6 = vpop.f32.mrb[7].mxu0  ;;  %661 = vmatmul.mubr.bf16.vlgmr.msra.gmra.mrb[0].mxu1 %v229_v62  ;;  %v222_v8 = vmax.f32 %v194_v1, 0.0 }
  0xfb   :  { %v189_v7 = vadd.f32 %v560_v49, %v188_v6  ;;  %v220_v10 = vmax.f32 %v186_v3, 0.0 }
  0xfc   :  { %v223_v9 = vmax.f32 %v197_v5, 0.0 }
  0xfd   :  { %v221_v11 = vmax.f32 %v189_v7, 0.0 }
  0xfe   :  { %v231_v12 = vpack.c.bf16 %v223_v9, %v222_v8 }
  0xff   :  { %v230_v13 = vpack.c.bf16 %v221_v11, %v220_v10  ;;  %v642_v14 = vpop.f32.mrb[8].mxu0 }
 0x100   :  { %v210_v15 = vadd.f32 %v642_v14, %v560_v49  ;;  %v201_v16 = vpop.f32.mrb[9].mxu0 }
 0x101   :  { %v202_v17 = vadd.f32 %v560_v49, %v201_v16  ;;  %v643_v18 = vpop.f32.mrb[10].mxu0  ;;  %664 = vmatprep.mubr.bf16.mxu1 %v230_v13 }
 0x102   :  { %v213_v19 = vadd.f32 %v643_v18, %v560_v49  ;;  %v204_v20 = vpop.f32.mrb[11].mxu0  ;;  %665 = vmatmul.mubr.bf16.gmra.mrb[4].mxu1 %v231_v12  ;;  %v226_v22 = vmax.f32 %v210_v15, 0.0 }
 0x103   :  { %v205_v21 = vadd.f32 %v560_v49, %v204_v20  ;;  %v224_v24 = vmax.f32 %v202_v17, 0.0 }
 0x104   :  { %v227_v23 = vmax.f32 %v213_v19, 0.0 }
 0x105   :  { %v225_v25 = vmax.f32 %v205_v21, 0.0 }
 0x106   :  { %v233_v26 = vpack.c.bf16 %v227_v23, %v226_v22 }
 0x107   :  { %v232_v27 = vpack.c.bf16 %v225_v25, %v224_v24  ;;  %v678_v28 = vpop.f32.mrb[12].mxu0 }
 0x108   :  { %v484_v29 = vpop.f32.mrb[13].mxu0 }
 0x109   :  { %668 = vmatprep.mubr.bf16.mxu1 %v232_v27  ;;  %v679_v30 = vpop.f32.mrb[14].mxu0 }
 0x10a   :  { %669 = vmatmul.mubr.bf16.gmra.mrb[8].mxu1 %v233_v26  ;;  %v487_v31 = vpop.f32.mrb[15].mxu0 }
 0x10f   :  { %v682_v32 = vpop.f32.mrb[16].mxu0 }
 0x110   :  { %v500_v33 = vpop.f32.mrb[17].mxu0 }
 0x111   :  { %v683_v34 = vpop.f32.mrb[18].mxu0 }
 0x112   :  { %v503_v35 = vpop.f32.mrb[19].mxu0 }
 0x117   :  { %v686_v36 = vpop.f32.mrb[20].mxu0 }
 0x118   :  { %v516_v37 = vpop.f32.mrb[21].mxu0 }
 0x119   :  { %v687_v38 = vpop.f32.mrb[22].mxu0 }
 0x11a   :  { %v519_v39 = vpop.f32.mrb[23].mxu0 }
 0x1cd   :  { %v662_v41 = vpop.f32.mrb[0].mxu1 }
 0x1ce   :  { %v348_v42 = vadd.f32 %v662_v41, %v575_v40  ;;  %v339_v43 = vpop.f32.mrb[1].mxu1 }
 0x1cf   :  { %v340_v44 = vadd.f32 %v575_v40, %v339_v43  ;;  %v663_v45 = vpop.f32.mrb[2].mxu1 }
 0x1d0   :  { %v493_v46 = vadd.f32 %v678_v28, %v348_v42  ;;  %v351_v47 = vadd.f32 %v663_v45, %v575_v40  ;;  %v342_v48 = vpop.f32.mrb[3].mxu1 }
 0x1d1   :  { %v485_v49 = vadd.f32 %v484_v29, %v340_v44  ;;  %v343_v50 = vadd.f32 %v575_v40, %v342_v48 }
 0x1d2   :  { %533 = vst [vmem:[#allocation5 + $0x10] sm:$0xff] %v493_v46  ;;  %v496_v51 = vadd.f32 %v679_v30, %v351_v47 }
 0x1d3   :  { %531 = vst [vmem:[#allocation5] sm:$0xff] %v485_v49  ;;  %v488_v52 = vadd.f32 %v487_v31, %v343_v50 }
 0x1d4   :  { %534 = vst [vmem:[#allocation5 + $0x18] sm:$0xff] %v496_v51 }
 0x1d5   :  { %532 = vst [vmem:[#allocation5 + $0x8] sm:$0xff] %v488_v52  ;;  %v666_v53 = vpop.f32.mrb[4].mxu1 }
 0x1d6   :  { %v364_v54 = vadd.f32 %v666_v53, %v575_v40  ;;  %v355_v55 = vpop.f32.mrb[5].mxu1 }
 0x1d7   :  { %v356_v56 = vadd.f32 %v575_v40, %v355_v55  ;;  %v667_v57 = vpop.f32.mrb[6].mxu1 }
 0x1d8   :  { %v509_v58 = vadd.f32 %v682_v32, %v364_v54  ;;  %v367_v59 = vadd.f32 %v667_v57, %v575_v40  ;;  %v358_v60 = vpop.f32.mrb[7].mxu1 }
 0x1d9   :  { %v501_v61 = vadd.f32 %v500_v33, %v356_v56  ;;  %v359_v62 = vadd.f32 %v575_v40, %v358_v60 }
 0x1da   :  { %537 = vst [vmem:[#allocation5 + $0x30] sm:$0xff] %v509_v58  ;;  %v512_v63 = vadd.f32 %v683_v34, %v367_v59 }
 0x1db   :  { %535 = vst [vmem:[#allocation5 + $0x20] sm:$0xff] %v501_v61  ;;  %v504_v0 = vadd.f32 %v503_v35, %v359_v62 }
 0x1dc   :  { %538 = vst [vmem:[#allocation5 + $0x38] sm:$0xff] %v512_v63 }
 0x1dd   :  { %536 = vst [vmem:[#allocation5 + $0x28] sm:$0xff] %v504_v0  ;;  %v670_v1 = vpop.f32.mrb[8].mxu1 }
 0x1de   :  { %v380_v2 = vadd.f32 %v670_v1, %v575_v40  ;;  %v371_v3 = vpop.f32.mrb[9].mxu1 }
 0x1df   :  { %v372_v4 = vadd.f32 %v575_v40, %v371_v3  ;;  %v671_v5 = vpop.f32.mrb[10].mxu1 }
 0x1e0   :  { %v525_v6 = vadd.f32 %v686_v36, %v380_v2  ;;  %v383_v7 = vadd.f32 %v671_v5, %v575_v40  ;;  %v374_v8 = vpop.f32.mrb[11].mxu1 }
 0x1e1   :  { %v517_v9 = vadd.f32 %v516_v37, %v372_v4  ;;  %v375_v10 = vadd.f32 %v575_v40, %v374_v8 }
 0x1e2   :  { %541 = vst [vmem:[#allocation5 + $0x50] sm:$0xff] %v525_v6  ;;  %v528_v11 = vadd.f32 %v687_v38, %v383_v7 }
 0x1e3   :  { %539 = vst [vmem:[#allocation5 + $0x40] sm:$0xff] %v517_v9  ;;  %v520_v12 = vadd.f32 %v519_v39, %v375_v10 }
 0x1e4   :  { %542 = vst [vmem:[#allocation5 + $0x58] sm:$0xff] %v528_v11 }
 0x1e5   :  { %540 = vst [vmem:[#allocation5 + $0x48] sm:$0xff] %v520_v12 }
 0x1e6   :  { %770 = shalt.err (!%p767_p12)
}
 0x1e7   :  { %s771_s9 = scalar_lea.hbm %s961_s6, 1536 }
 0x1e8   :  { %p772_p13 = scmp.ne.s32.totalorder %s961_s6, %s771_s9  ;;  %p775_p0 = scmp.lt.u32.totalorder %s771_s9, %s961_s6 }
 0x1ea   :  { %p777_p1 = pnand %p775_p0, %p772_p13 }
 0x1ec   :  { %780 = shalt.err (!%p777_p1)
}
 0x1ed   :  { %s790_s14 = smov 128   ;;  %s791_s15 = smov 8  }
 0x1ee   :  { %554 = dma.vmem_to_hbm [thread:$0]  %s549_s29, 1536, %s961_s6, [#allocation4], %s790_s14, %s790_s14, %s791_s15  }
 0x1ef   :  { %783 = dma.done.wait [#allocation4], 1536  }
 0x1f0   :  { %784 = vsyncadd [#allocation4], 4294965760 }
 0x1f1   :  { %558 = vsyncpa [#allocation3], 1 }
 0x1f2   :  { %559 = vsyncpa [#allocation4], 1 }

// kernel: tpu_custom_call.1
= control target key start
LH: loop header
LB: loop body
LE: loop exit
PB: predicated region body
PF: predicated region fallthrough
CT: control target
= control target key end

     0   :  { %11 = vsyncpa [#allocation3], 0  ;;  %s955_s0 = inlined_call_operand.vmem [shape: bf16[96,32], index: 0, kind: input, shape index: {}]   ;;  %s956_s1 = inlined_call_operand.hbm [shape: bf16[32,128], index: 1, kind: input, shape index: {}]   ;;  %s957_s2 = inlined_call_operand.vmem [shape: f32[1,128], index: 2, kind: input, shape index: {}]   ;;  %s958_s3 = inlined_call_operand.vmem [shape: bf16[128,128], index: 3, kind: input, shape index: {}]   ;;  %s959_s4 = inlined_call_operand.vmem [shape: f32[1,128], index: 4, kind: input, shape index: {}]   ;;  %s960_s5 = inlined_call_operand.vmem [shape: bf16[32,128], index: 5, kind: input, shape index: {}]   ;;  %s961_s6 = inlined_call_operand.hbm [shape: f32[96,128], index: 6, kind: output, shape index: {}]  }
   0x1   :  { %12 = vsyncpa [#allocation4], 0  ;;  %s785_s21 = smov [#allocation2]   ;;  %s737_s25 = scalar_lea.hbm %s956_s1, 256 }
   0x2   :  { %s20_s22 = sshll.u32 %s785_s21, 4  ;;  %p738_p0 = scmp.ne.s32.totalorder %s956_s1, %s737_s25  ;;  %s21_s22 = int_to_ptr.vmem [resolvable:$true] %s20_s22 }
   0x3   :  { %p741_p1 = scmp.lt.u32.totalorder %s737_s25, %s956_s1 }
   0x5   :  { %p743_p2 = pnand %p741_p1, %p738_p0 }
   0x7   :  { %746 = shalt.err (!%p743_p2)
}
   0x8   :  { %s747_s30 = scalar_lea.vmem %s21_s22, 256  ;;  %p752_p4 = scmp.lt.s32.totalorder %s21_s22, %s21_s22 }
   0x9   :  { %p748_p3 = scmp.ne.s32.totalorder %s21_s22, %s747_s30  ;;  %p753_p5 = scmp.lt.s32.totalorder %s747_s30, %s747_s30 }
   0xb   :  { %p754_p6 = por %p753_p5, %p752_p4 }
   0xd   :  { %p755_p7 = pnand %p754_p6, %p748_p3 }
   0xf   :  { %758 = shalt.err (!%p755_p7)
}
  0x10   :  { %s786_s7 = smov 64   ;;  %s787_s8 = smov 4  }
  0x11   :  { %26 = dma.hbm_to_vmem [thread:$0]  %s956_s1, 256, %s21_s22, [#allocation3], %s786_s7, %s786_s7, %s787_s8  }
  0x12   :  { %781 = dma.done.wait [#allocation3], 256  }
  0x13   :  { %782 = vsyncadd [#allocation3], 4294967040  ;;  %v719_v0 = vld [vmem:[#allocation2] sm:$0xff]   ;;  %v720_v1 = vld [vmem:[#allocation2 + $0x8] sm:$0xff]   ;;  %vm116_vm0 = vcmask 261120   ;;  %v788_v5 = vmov 0  }
  0x14   :  { %628 = vmatprep.subr.bf16.mxu0 %v719_v0  ;;  %v842_v2 = vld [vmem:[%s955_s0] sm:$0xf]  ;;  %v40_v3 = vld [vmem:[%s955_s0 + $0x4] sm:$0xf]  ;;  %v850_v4 = vld [vmem:[%s955_s0 + $0x8] sm:$0xf] }
  0x15   :  { %629 = vmatpush3.bf16.msra.mxu0 %v719_v0  ;;  %v51_v6 = vmax.bf16 %v788_v5, %v842_v2  ;;  %v52_v7 = vmax.bf16 %v788_v5, %v40_v3  ;;  %v856_v8 = vld [vmem:[%s955_s0 + $0xc] sm:$0xf]  ;;  %v53_v9 = vmax.bf16 %v788_v5, %v850_v4  ;;  %v862_v10 = vld [vmem:[%s955_s0 + $0x10] sm:$0xf]  ;;  %v867_v11 = vld [vmem:[%s955_s0 + $0x14] sm:$0xf]  ;;  %v584_v41 = vcombine.low %v842_v2, %v40_v3 }
  0x16   :  { %630 = vmatprep.subr.bf16.mxu0 %v720_v1  ;;  %v54_v12 = vmax.bf16 %v788_v5, %v856_v8  ;;  %v585_v13 = vcombine.low %v850_v4, %v856_v8  ;;  %v55_v14 = vmax.bf16 %v788_v5, %v862_v10  ;;  %v56_v15 = vmax.bf16 %v788_v5, %v867_v11  ;;  %v45_v17 = vld [vmem:[%s955_s0 + $0x18] sm:$0xf]  ;;  %v46_v18 = vld [vmem:[%s955_s0 + $0x1c] sm:$0xf]  ;;  %v47_v20 = vld [vmem:[%s955_s0 + $0x20] sm:$0xf] }
  0x17   :  { %v561_v16 = vcombine.low %v51_v6, %v52_v7  ;;  %v723_v21 = vld [vmem:[%s958_s3] sm:$0xff]   ;;  %v724_v23 = vld [vmem:[%s958_s3 + $0x8] sm:$0xff]   ;;  %v57_v26 = vmax.bf16 %v788_v5, %v45_v17  ;;  %v58_v27 = vmax.bf16 %v788_v5, %v46_v18  ;;  %v725_v28 = vld [vmem:[%s958_s3 + $0x10] sm:$0xff]   ;;  %v59_v29 = vmax.bf16 %v788_v5, %v47_v20 }
  0x18   :  { %v562_v19 = vcombine.low %v53_v9, %v54_v12  ;;  %v563_v22 = vcombine.low %v55_v14, %v56_v15  ;;  %v48_v24 = vld [vmem:[%s955_s0 + $0x24] sm:$0xf]  ;;  %644 = vmatprep.subr.bf16.mxu1 %v723_v21  ;;  %v727_v31 = vld [vmem:[%s958_s3 + $0x18] sm:$0xff]   ;;  %v49_v34 = vld [vmem:[%s955_s0 + $0x28] sm:$0xf]  ;;  %v586_v45 = vcombine.low %v862_v10, %v867_v11  ;;  %v587_v46 = vcombine.low %v45_v17, %v46_v18 }
  0x19   :  { %631 = vmatpush3.bf16.msra.mxu0 %v720_v1  ;;  %632 = vmatprep.mubr.msk.bf16.mxu0 %vm116_vm0, %v561_v16  ;;  %v726_v25 = vld [vmem:[%s960_s5] sm:$0xff]   ;;  %v60_v30 = vmax.bf16 %v788_v5, %v48_v24  ;;  %v564_v32 = vcombine.low %v57_v26, %v58_v27  ;;  %v50_v35 = vld [vmem:[%s955_s0 + $0x2c] sm:$0xf]  ;;  %v61_v36 = vmax.bf16 %v788_v5, %v49_v34  ;;  %v731_v42 = vld [vmem:[%s958_s3 + $0x30] sm:$0xff]  }
  0x1a   :  { %645 = vmatpush3.bf16.msra.mxu1 %v723_v21  ;;  %672 = vmatprep.subr.bf16.mxu0 %v726_v25  ;;  %v62_v37 = vmax.bf16 %v788_v5, %v50_v35  ;;  %v728_v38 = vld [vmem:[%s958_s3 + $0x20] sm:$0xff]   ;;  %v729_v40 = vld [vmem:[%s958_s3 + $0x28] sm:$0xff]   ;;  %v732_v44 = vld [vmem:[%s958_s3 + $0x38] sm:$0xff]   ;;  %v588_v47 = vcombine.low %v47_v20, %v48_v24  ;;  %v589_v48 = vcombine.low %v49_v34, %v50_v35 }
  0x1b   :  { %646 = vmatprep.subr.bf16.mxu1 %v724_v23  ;;  %v565_v33 = vcombine.low %v59_v29, %v60_v30  ;;  %v730_v43 = vld [vmem:[%s960_s5 + $0x8] sm:$0xff]   ;;  %v560_v49 = vld [vmem:[%s957_s2] ss:$0 sm:$0xff] }
  0x1c   :  { %633 = vmatmul.mubr.msk.bf16.vlgmr.msra.gmra.mrb[0].mxu0 %vm116_vm0, %v562_v19  ;;  %v566_v39 = vcombine.low %v61_v36, %v62_v37 }
  0x1d   :  { %636 = vmatprep.mubr.msk.bf16.mxu0 %vm116_vm0, %v563_v22  ;;  %673 = vmatpush3.bf16.msra.mxu0 %v726_v25 }
  0x1e   :  { %647 = vmatpush3.bf16.msra.mxu1 %v724_v23  ;;  %674 = vmatprep.subr.bf16.mxu0 %v730_v43 }
  0x1f   :  { %648 = vmatprep.subr.bf16.mxu1 %v725_v28 }
  0x21   :  { %675 = vmatpush3.bf16.msra.mxu0 %v730_v43 }
  0x22   :  { %649 = vmatpush3.bf16.msra.mxu1 %v725_v28 }
  0x23   :  { %650 = vmatprep.subr.bf16.mxu1 %v727_v31 }
  0x24   :  { %637 = vmatmul.mubr.msk.bf16.gmra.mrb[4].mxu0 %vm116_vm0, %v564_v32 }
  0x25   :  { %640 = vmatprep.mubr.msk.bf16.mxu0 %vm116_vm0, %v565_v33 }
  0x26   :  { %651 = vmatpush3.bf16.msra.mxu1 %v727_v31 }
  0x27   :  { %652 = vmatprep.subr.bf16.mxu1 %v728_v38 }
  0x2a   :  { %653 = vmatpush3.bf16.msra.mxu1 %v728_v38 }
  0x2b   :  { %654 = vmatprep.subr.bf16.mxu1 %v729_v40 }
  0x2c   :  { %641 = vmatmul.mubr.msk.bf16.gmra.mrb[8].mxu0 %vm116_vm0, %v566_v39 }
  0x2d   :  { %676 = vmatprep.mubr.msk.bf16.mxu0 %vm116_vm0, %v584_v41 }
  0x2e   :  { %655 = vmatpush3.bf16.msra.mxu1 %v729_v40  ;;  %v575_v40 = vld [vmem:[%s959_s4] ss:$0 sm:$0xff]  ;;  %s789_s4 = smov [#allocation5]  }
  0x2f   :  { %656 = vmatprep.subr.bf16.mxu1 %v731_v42  ;;  %s548_s29 = sshll.u32 %s789_s4, 4  ;;  %s549_s29 = int_to_ptr.vmem [resolvable:$true] %s548_s29 }
  0x30   :  { %s759_s30 = scalar_lea.vmem %s549_s29, 1536  ;;  %p764_p9 = scmp.lt.s32.totalorder %s549_s29, %s549_s29 }
  0x31   :  { %p760_p8 = scmp.ne.s32.totalorder %s549_s29, %s759_s30  ;;  %p765_p10 = scmp.lt.s32.totalorder %s759_s30, %s759_s30 }
  0x32   :  { %657 = vmatpush3.bf16.msra.mxu1 %v731_v42 }
  0x33   :  { %658 = vmatprep.subr.bf16.mxu1 %v732_v44  ;;  %p766_p11 = por %p765_p10, %p764_p9 }
  0x34   :  { %677 = vmatmul.mubr.msk.bf16.vlgmr.msra.gmra.mrb[12].mxu0 %vm116_vm0, %v585_v13 }
  0x35   :  { %680 = vmatprep.mubr.msk.bf16.mxu0 %vm116_vm0, %v586_v45  ;;  %p767_p12 = pnand %p766_p11, %p760_p8 }
  0x36   :  { %659 = vmatpush3.bf16.msra.mxu1 %v732_v44 }
  0x3c   :  { %681 = vmatmul.mubr.msk.bf16.gmra.mrb[16].mxu0 %vm116_vm0, %v587_v46 }
  0x3d   :  { %684 = vmatprep.mubr.msk.bf16.mxu0 %vm116_vm0, %v588_v47 }
  0x44   :  { %685 = vmatmul.mubr.msk.bf16.gmra.mrb[20].mxu0 %vm116_vm0, %v589_v48 }
  0xef   :  { %v634_v50 = vpop.f32.mrb[0].mxu0 }
  0xf0   :  { %v178_v51 = vadd.f32 %v634_v50, %v560_v49  ;;  %v169_v52 = vpop.f32.mrb[1].mxu0 }
  0xf1   :  { %v170_v53 = vadd.f32 %v560_v49, %v169_v52  ;;  %v635_v54 = vpop.f32.mrb[2].mxu0 }
  0xf2   :  { %v181_v55 = vadd.f32 %v635_v54, %v560_v49  ;;  %v172_v56 = vpop.f32.mrb[3].mxu0  ;;  %v218_v58 = vmax.f32 %v178_v51, 0.0 }
  0xf3   :  { %v173_v57 = vadd.f32 %v560_v49, %v172_v56  ;;  %v216_v60 = vmax.f32 %v170_v53, 0.0 }
  0xf4   :  { %v219_v59 = vmax.f32 %v181_v55, 0.0 }
  0xf5   :  { %v217_v61 = vmax.f32 %v173_v57, 0.0 }
  0xf6   :  { %v229_v62 = vpack.c.bf16 %v219_v59, %v218_v58 }
  0xf7   :  { %v638_v63 = vpop.f32.mrb[4].mxu0  ;;  %v228_v0 = vpack.c.bf16 %v217_v61, %v216_v60 }
  0xf8   :  { %v194_v1 = vadd.f32 %v638_v63, %v560_v49  ;;  %v185_v2 = vpop.f32.mrb[5].mxu0 }
  0xf9   :  { %v186_v3 = vadd.f32 %v560_v49, %v185_v2  ;;  %v639_v4 = vpop.f32.mrb[6].mxu0  ;;  %660 = vmatprep.mubr.bf16.mxu1 %v228_v0 }
  0xfa   :  { %v197_v5 = vadd.f32 %v639_v4, %v560_v49  ;;  %v188_v6 = vpop.f32.mrb[7].mxu0  ;;  %661 = vmatmul.mubr.bf16.vlgmr.msra.gmra.mrb[0].mxu1 %v229_v62  ;;  %v222_v8 = vmax.f32 %v194_v1, 0.0 }
  0xfb   :  { %v189_v7 = vadd.f32 %v560_v49, %v188_v6  ;;  %v220_v10 = vmax.f32 %v186_v3, 0.0 }
  0xfc   :  { %v223_v9 = vmax.f32 %v197_v5, 0.0 }
  0xfd   :  { %v221_v11 = vmax.f32 %v189_v7, 0.0 }
  0xfe   :  { %v231_v12 = vpack.c.bf16 %v223_v9, %v222_v8 }
  0xff   :  { %v230_v13 = vpack.c.bf16 %v221_v11, %v220_v10  ;;  %v642_v14 = vpop.f32.mrb[8].mxu0 }
 0x100   :  { %v210_v15 = vadd.f32 %v642_v14, %v560_v49  ;;  %v201_v16 = vpop.f32.mrb[9].mxu0 }
 0x101   :  { %v202_v17 = vadd.f32 %v560_v49, %v201_v16  ;;  %v643_v18 = vpop.f32.mrb[10].mxu0  ;;  %664 = vmatprep.mubr.bf16.mxu1 %v230_v13 }
 0x102   :  { %v213_v19 = vadd.f32 %v643_v18, %v560_v49  ;;  %v204_v20 = vpop.f32.mrb[11].mxu0  ;;  %665 = vmatmul.mubr.bf16.gmra.mrb[4].mxu1 %v231_v12  ;;  %v226_v22 = vmax.f32 %v210_v15, 0.0 }
 0x103   :  { %v205_v21 = vadd.f32 %v560_v49, %v204_v20  ;;  %v224_v24 = vmax.f32 %v202_v17, 0.0 }
 0x104   :  { %v227_v23 = vmax.f32 %v213_v19, 0.0 }
 0x105   :  { %v225_v25 = vmax.f32 %v205_v21, 0.0 }
 0x106   :  { %v233_v26 = vpack.c.bf16 %v227_v23, %v226_v22 }
 0x107   :  { %v232_v27 = vpack.c.bf16 %v225_v25, %v224_v24  ;;  %v678_v28 = vpop.f32.mrb[12].mxu0 }
 0x108   :  { %v484_v29 = vpop.f32.mrb[13].mxu0 }
 0x109   :  { %668 = vmatprep.mubr.bf16.mxu1 %v232_v27  ;;  %v679_v30 = vpop.f32.mrb[14].mxu0 }
 0x10a   :  { %669 = vmatmul.mubr.bf16.gmra.mrb[8].mxu1 %v233_v26  ;;  %v487_v31 = vpop.f32.mrb[15].mxu0 }
 0x10f   :  { %v682_v32 = vpop.f32.mrb[16].mxu0 }
 0x110   :  { %v500_v33 = vpop.f32.mrb[17].mxu0 }
 0x111   :  { %v683_v34 = vpop.f32.mrb[18].mxu0 }
 0x112   :  { %v503_v35 = vpop.f32.mrb[19].mxu0 }
 0x117   :  { %v686_v36 = vpop.f32.mrb[20].mxu0 }
 0x118   :  { %v516_v37 = vpop.f32.mrb[21].mxu0 }
 0x119   :  { %v687_v38 = vpop.f32.mrb[22].mxu0 }
 0x11a   :  { %v519_v39 = vpop.f32.mrb[23].mxu0 }
 0x1cd   :  { %v662_v41 = vpop.f32.mrb[0].mxu1 }
 0x1ce   :  { %v348_v42 = vadd.f32 %v662_v41, %v575_v40  ;;  %v339_v43 = vpop.f32.mrb[1].mxu1 }
 0x1cf   :  { %v340_v44 = vadd.f32 %v575_v40, %v339_v43  ;;  %v663_v45 = vpop.f32.mrb[2].mxu1 }
 0x1d0   :  { %v493_v46 = vadd.f32 %v678_v28, %v348_v42  ;;  %v351_v47 = vadd.f32 %v663_v45, %v575_v40  ;;  %v342_v48 = vpop.f32.mrb[3].mxu1 }
 0x1d1   :  { %v485_v49 = vadd.f32 %v484_v29, %v340_v44  ;;  %v343_v50 = vadd.f32 %v575_v40, %v342_v48 }
 0x1d2   :  { %533 = vst [vmem:[#allocation5 + $0x10] sm:$0xff] %v493_v46  ;;  %v496_v51 = vadd.f32 %v679_v30, %v351_v47 }
 0x1d3   :  { %531 = vst [vmem:[#allocation5] sm:$0xff] %v485_v49  ;;  %v488_v52 = vadd.f32 %v487_v31, %v343_v50 }
 0x1d4   :  { %534 = vst [vmem:[#allocation5 + $0x18] sm:$0xff] %v496_v51 }
 0x1d5   :  { %532 = vst [vmem:[#allocation5 + $0x8] sm:$0xff] %v488_v52  ;;  %v666_v53 = vpop.f32.mrb[4].mxu1 }
 0x1d6   :  { %v364_v54 = vadd.f32 %v666_v53, %v575_v40  ;;  %v355_v55 = vpop.f32.mrb[5].mxu1 }
 0x1d7   :  { %v356_v56 = vadd.f32 %v575_v40, %v355_v55  ;;  %v667_v57 = vpop.f32.mrb[6].mxu1 }
 0x1d8   :  { %v509_v58 = vadd.f32 %v682_v32, %v364_v54  ;;  %v367_v59 = vadd.f32 %v667_v57, %v575_v40  ;;  %v358_v60 = vpop.f32.mrb[7].mxu1 }
 0x1d9   :  { %v501_v61 = vadd.f32 %v500_v33, %v356_v56  ;;  %v359_v62 = vadd.f32 %v575_v40, %v358_v60 }
 0x1da   :  { %537 = vst [vmem:[#allocation5 + $0x30] sm:$0xff] %v509_v58  ;;  %v512_v63 = vadd.f32 %v683_v34, %v367_v59 }
 0x1db   :  { %535 = vst [vmem:[#allocation5 + $0x20] sm:$0xff] %v501_v61  ;;  %v504_v0 = vadd.f32 %v503_v35, %v359_v62 }
 0x1dc   :  { %538 = vst [vmem:[#allocation5 + $0x38] sm:$0xff] %v512_v63 }
 0x1dd   :  { %536 = vst [vmem:[#allocation5 + $0x28] sm:$0xff] %v504_v0  ;;  %v670_v1 = vpop.f32.mrb[8].mxu1 }
 0x1de   :  { %v380_v2 = vadd.f32 %v670_v1, %v575_v40  ;;  %v371_v3 = vpop.f32.mrb[9].mxu1 }
 0x1df   :  { %v372_v4 = vadd.f32 %v575_v40, %v371_v3  ;;  %v671_v5 = vpop.f32.mrb[10].mxu1 }
 0x1e0   :  { %v525_v6 = vadd.f32 %v686_v36, %v380_v2  ;;  %v383_v7 = vadd.f32 %v671_v5, %v575_v40  ;;  %v374_v8 = vpop.f32.mrb[11].mxu1 }
 0x1e1   :  { %v517_v9 = vadd.f32 %v516_v37, %v372_v4  ;;  %v375_v10 = vadd.f32 %v575_v40, %v374_v8 }
 0x1e2   :  { %541 = vst [vmem:[#allocation5 + $0x50] sm:$0xff] %v525_v6  ;;  %v528_v11 = vadd.f32 %v687_v38, %v383_v7 }
 0x1e3   :  { %539 = vst [vmem:[#allocation5 + $0x40] sm:$0xff] %v517_v9  ;;  %v520_v12 = vadd.f32 %v519_v39, %v375_v10 }
 0x1e4   :  { %542 = vst [vmem:[#allocation5 + $0x58] sm:$0xff] %v528_v11 }
 0x1e5   :  { %540 = vst [vmem:[#allocation5 + $0x48] sm:$0xff] %v520_v12 }
 0x1e6   :  { %770 = shalt.err (!%p767_p12)
}
 0x1e7   :  { %s771_s9 = scalar_lea.hbm %s961_s6, 1536 }
 0x1e8   :  { %p772_p13 = scmp.ne.s32.totalorder %s961_s6, %s771_s9  ;;  %p775_p0 = scmp.lt.u32.totalorder %s771_s9, %s961_s6 }
 0x1ea   :  { %p777_p1 = pnand %p775_p0, %p772_p13 }
 0x1ec   :  { %780 = shalt.err (!%p777_p1)
}
 0x1ed   :  { %s790_s14 = smov 128   ;;  %s791_s15 = smov 8  }
 0x1ee   :  { %554 = dma.vmem_to_hbm [thread:$0]  %s549_s29, 1536, %s961_s6, [#allocation4], %s790_s14, %s790_s14, %s791_s15  }
 0x1ef   :  { %783 = dma.done.wait [#allocation4], 1536  }
 0x1f0   :  { %784 = vsyncadd [#allocation4], 4294965760 }
 0x1f1   :  { %558 = vsyncpa [#allocation3], 1 }
 0x1f2   :  { %559 = vsyncpa [#allocation4], 1 }

</bundles_post_ra>
